<compile_context>
chip_gen: v5e
topology: v5e:2x2
jax: 0.10.0
libtpu: 0.0.40
codegen_flags: <defaults>
</compile_context>

<pallas_src>
import jax
import jax.numpy as jnp
from jax.experimental import pallas as pl
from jax.experimental.pallas import tpu as pltpu


# ----------------------------------------------------------------------------
# Kernel body: tiled identity copy (only used when a pallas_call boundary is
# explicitly requested; the plain forward just returns M).
# ----------------------------------------------------------------------------
def _copy_kernel(m_ref, o_ref):
    o_ref[...] = m_ref[...]


def _round_up(x, m):
    return ((x + m - 1) // m) * m


def _choose_tiles(n_cell, n_spot, dtype, tile_budget_bytes):
    """Pick (tm, tn) obeying the (8,128) layout rule and a VMEM tile budget."""
    itemsize = jnp.dtype(dtype).itemsize
    sub = max(8, 32 // max(itemsize, 1))   # f32 -> 8, bf16 -> 16, int8/fp8 -> 32
    lane = 128

    # Lane (last) axis: multiples of 128 give unmasked, lane-dense `vst`.
    # A width that is not a multiple of 128 must be the full dim per the
    # (8,128) rule, so fall back to the full extent in that case.
    if n_spot % lane == 0:
        max_lanes = max(lane,
                        (tile_budget_bytes // (sub * itemsize)) // lane * lane)
        tn = min(n_spot, max_lanes)
    else:
        tn = n_spot

    # Sublane (row) axis: dtype-aware alignment, budget-capped, ragged tail OK.
    if n_cell <= sub:
        return n_cell, tn                  # full-extent rows are always legal

    bytes_per_row = max(tn * itemsize, 1)
    tm = max(sub, (tile_budget_bytes // bytes_per_row) // sub * sub)
    tm = min(tm, 2048)
    if tm >= n_cell:
        if n_cell >= 2 * sub:
            # Split into >=2 row blocks so ("parallel", ...) shards across
            # v7x's two TensorCores (harmless on the 1-TC v5e/v6e).
            tm = _round_up(pl.cdiv(n_cell, 2), sub)
        else:
            tm = n_cell                    # single full-extent block
    return tm, tn


# ----------------------------------------------------------------------------
# Forward passes.
# ----------------------------------------------------------------------------
def encoder_map_forward(M):
    """Encoder_map.forward(): identity.  Zero-cost path (no copy, no kernel)."""
    return M


def encoder_map_forward_pallas(M, *, tile_budget_bytes=4 << 20):
    """Identity forward expressed as a single pallas_call (aliased in/out)."""
    n_cell, n_spot = M.shape
    itemsize = jnp.dtype(M.dtype).itemsize
    tm, tn = _choose_tiles(n_cell, n_spot, M.dtype, tile_budget_bytes)
    grid = (pl.cdiv(n_cell, tm), pl.cdiv(n_spot, tn))

    tile_bytes = tm * tn * itemsize
    # Double-buffered in + out ~= 4x tile bytes; add headroom, stay <= 64 MiB
    # (v7x physical VMEM per TC).
    vmem_limit = min(64 << 20, max(32 << 20, 4 * tile_bytes + (2 << 20)))

    return pl.pallas_call(
        _copy_kernel,
        out_shape=jax.ShapeDtypeStruct((n_cell, n_spot), M.dtype),
        grid=grid,
        in_specs=[pl.BlockSpec((tm, tn), lambda i, j: (i, j))],
        out_specs=pl.BlockSpec((tm, tn), lambda i, j: (i, j)),
        input_output_aliases={0: 0},       # output buffer == input buffer
        cost_estimate=pl.CostEstimate(
            flops=0,
            transcendentals=0,
            bytes_accessed=2 * n_cell * n_spot * itemsize),
        compiler_params=pltpu.CompilerParams(
            dimension_semantics=("parallel", "parallel"),
            vmem_limit_bytes=vmem_limit),
    )(M)


# ----------------------------------------------------------------------------
# Host-side parameter construction (torch.nn.init.xavier_uniform_ equivalent).
# ----------------------------------------------------------------------------
def xavier_uniform(key, shape, dtype=jnp.float32):
    fan_in, fan_out = shape
    limit = (6.0 / (fan_in + fan_out)) ** 0.5
    return jax.random.uniform(key, shape, dtype, -limit, limit)


if __name__ == "__main__":
    key = jax.random.PRNGKey(0)

    # Small shapes consistent with the module: n_cell cells x n_spot spots.
    n_cell, n_spot = 64, 256
    M = xavier_uniform(key, (n_cell, n_spot))

    # Zero-cost path (the actual recommended forward).
    out_free = encoder_map_forward(M)
    assert out_free.shape == (n_cell, n_spot)

    # Pallas-call path (aliased identity copy), aligned shapes.
    fwd = jax.jit(encoder_map_forward_pallas)
    out = fwd(M)
    jax.block_until_ready(out)
    assert out.shape == (n_cell, n_spot)
    assert out.dtype == M.dtype
    assert bool(jnp.allclose(out, M)), "forward must return M unchanged"

    # Robustness check: ragged row count (cdiv grid, masked last block).
    key2 = jax.random.PRNGKey(0)
    M2 = xavier_uniform(key2, (20, 384))
    out2 = jax.jit(encoder_map_forward_pallas)(M2)
    jax.block_until_ready(out2)
    assert out2.shape == (20, 384)
    assert bool(jnp.allclose(out2, M2)), "ragged-grid forward must return M unchanged"

    print("KERNEL_OK")
</pallas_src>

<mosaic_0001>
module attributes {stable_mosaic.version = 11 : i64} {
  func.func @_copy_kernel(%arg0: i32, %arg1: i32, %arg2: memref<32x256xf32, #tpu.memory_space<vmem>>, %arg3: memref<32x256xf32, #tpu.memory_space<vmem>>) attributes {dimension_semantics = [#tpu.dimension_semantics<parallel>, #tpu.dimension_semantics<parallel>], iteration_bounds = array<i64: 2, 1>, scalar_prefetch = 0 : i64, scratch_operands = 0 : i64, tpu.core_type = #tpu.core_type<tc>, window_params = [{transform_indices = @transform_0, window_bounds = array<i64: 32, 256>}, {transform_indices = @transform_1, window_bounds = array<i64: 32, 256>}]} {
    %c0 = arith.constant 0 : index
    %c0_0 = arith.constant 0 : index
    %0 = vector.load %arg2[%c0, %c0_0] : memref<32x256xf32, #tpu.memory_space<vmem>>, vector<32x256xf32>
    %c0_1 = arith.constant 0 : index
    %c0_2 = arith.constant 0 : index
    %1 = vector.load %arg3[%c0_1, %c0_2] : memref<32x256xf32, #tpu.memory_space<vmem>>, vector<32x256xf32>
    tpu.vector_store %arg3[%c0_1, %c0_2], %0 {strides = array<i32>} : memref<32x256xf32, #tpu.memory_space<vmem>>, vector<32x256xf32>,
    return
  }
  func.func @transform_0(%arg0: i32, %arg1: i32) -> (i32, i32) {
    %c0_i32 = arith.constant 0 : i32
    return %arg0, %arg1 : i32, i32
  }
  func.func @transform_1(%arg0: i32, %arg1: i32) -> (i32, i32) {
    %c0_i32 = arith.constant 0 : i32
    return %arg0, %arg1 : i32, i32
  }
}

</mosaic_0001>

<bundles_post_ra>
// kernel: encoder_map_forward_pallas.1
= control target key start
LH: loop header
LB: loop body
LE: loop exit
PB: predicated region body
PF: predicated region fallthrough
CT: control target
= control target key end

     0   :  { %6 = vsyncpa [#allocation3], 0  ;;  %s617_s0 = inlined_call_operand.hbm [shape: f32[64,256], index: 0, kind: input, shape index: {}, may-alias: {0,1}]   ;;  %s618_s1 = inlined_call_operand.hbm [shape: f32[64,256], index: 1, kind: output, shape index: {}, may-alias: {0,1}]  }
   0x1   :  { %8 = vsyncpa [#allocation3 + $0x1], 0 }
   0x2   :  { %9 = vsyncpa [#allocation4], 0 }
   0x3   :  { %11 = vsyncpa [#allocation4 + $0x1], 0  ;;  %s497_s6 = smov 0   ;;  %s499_s7 = smov 0  }
   0x4   :  { %s501_s8 = smov 0   ;;  %s503_s9 = smov 0  }
   0x5   :  { %s505_s10 = smov 0   ;;  %s507_s11 = smov 0  }
   0x6 LB: > { %s282_s12 = sadd.s32 4294967295, %s481_s11   ;;  %s283_s13 = sadd.s32 4294967294, %s481_s11   ;;  %s481_s11 = sphi %s507_s11, %s17_s11   ;;  %s477_s10 = sphi %s505_s10, %s627_s10   ;;  %s473_s9 = sphi %s503_s9, %s626_s9   ;;  %s469_s8 = sphi %s501_s8, %s625_s8   ;;  %s465_s7 = sphi %s499_s7, %s624_s7   ;;  %s461_s6 = sphi %s497_s6, %s623_s6  }
   0x7   : > { %s29_s14 = sadd.s32 1, %s477_s10  ;;  %s38_s15 = sadd.s32 1, %s469_s8 }
   0x8   : > { %p31_p0 = scmp.ge.s32.totalorder %s29_s14, 2  ;;  %p45_p1 = scmp.ne.s32.totalorder %s469_s8, %s465_s7 }
   0x9   : > { %p46_p2 = scmp.eq.s32.totalorder %s481_s11, 0  ;;  %p51_p3 = scmp.ne.s32.totalorder %s465_s7, %s461_s6 }
   0xa   : > { %s629_s14 = smov (%p31_p0, %s29_s14), 0  ;;  %p52_p5 = scmp.eq.s32.totalorder %s282_s12, 0 }
   0xb   : > { %p538_p4 = por %p46_p2, %p45_p1  ;;  %s33_s17 = ssub.s32 %s477_s10, %s629_s14 }
   0xc   : > { %p77_p6 = scmp.eq.s32.totalorder %s282_s12, 1  ;;  %p36_p7 = scmp.eq.s32.totalorder %s33_s17, 0 }
   0xd   : > { %p544_p8 = por %p52_p5, %p51_p3  ;;  %p83_p10 = scmp.eq.s32.totalorder %s283_s13, 1 }
   0xe   : > { %p548_p9 = por %p77_p6, %p45_p1  ;;  %p285_p12 = scmp.ge.s32.totalorder %s481_s11, 2 }
   0xf   : > { %s553_s20 = scalar_select %p36_p7, %s469_s8, %s38_s15  }
  0x10   : > { %p555_p11 = por %p83_p10, %p51_p3  ;;  %p315_p13 = scmp.lt.s32.totalorder %s481_s11, 2 }
  0x11   : > { %s103_s22 = sand.u32 1, %s469_s8   ;;  %s300_s24 = sshll.u32 %s477_s10, 6 }
  0x12   : > { %s286_s23 = sshll.u32 %s103_s22, 6  ;;  %s115_s27 = scalar_lea.hbm %s617_s0, %s300_s24 }
  0x13   : > { %s107_s28 = scalar_lea.vmem [#allocation2], %s286_s23  ;;  %s116_s30 = sshll.u32 %s115_s27, 4  ;;  %s117_s30 = int_to_ptr.hbm [resolvable:$true] %s116_s30 }
  0x14   : > { %s118_s29 = sshll.u32 %s107_s28, 4  ;;  %p308_p0 = pnand %p315_p13, %p538_p4  ;;  %s119_s29 = int_to_ptr.vmem [resolvable:$true] %s118_s29 }
  0x15   : > { %p290_p1 = scmp.ge.s32.totalorder %s481_s11, 1  ;;  %s104_s2 = scalar_lea.sflag [#allocation3], %s103_s22 }
  0x16   : > { %s483_s3 = smov 256   ;;  %s484_s4 = smov 16  }
  0x17   : > { %310 = dma.hbm_to_vmem [thread:$0]  (!%p308_p0), %s117_s30, 1024, %s119_s29, %s104_s2, %s483_s3, %s483_s3, %s484_s4  }
  0x18   : > { %p126_p2 = scmp.lt.s32.totalorder %s481_s11, 3 }
  0x1a   : > { %p127_p3 = pnand %p290_p1, %p126_p2 }
  0x1b   : > { %s571_s5 = sand.u32 (!%p127_p3), 1, %s465_s7  }
  0x1c   : > { %130 = sbr.rel (%p127_p3) target bundleno = 50 (0x32), region = 24  ;;  %s291_s12 = sshll.u32 (!%p127_p3), %s571_s5, 6 }
  0x1d   : > { %s133_s13 = scalar_lea.sflag (!%p127_p3), [#allocation3], %s571_s5  ;;  %s136_s15 = scalar_lea.vmem (!%p127_p3), [#allocation2], %s291_s12 }
  0x21   : > { %452 = dma.done.wait (%p544_p8), %s133_s13, 1024  }
  0x22   : > { %454 = vsyncadd (%p544_p8), %s133_s13, 4294966272  ;;  %s302_s16 = sshll.u32 %s473_s9, 6  ;;  %v160_v0 = vld [vmem:[%s136_s15] sm:$0xff]  ;;  %v161_v1 = vld [vmem:[%s136_s15 + $0x8] sm:$0xff]  ;;  %s155_s24 = scalar_lea.vmem [#allocation5], %s291_s12 }
  0x23   : > { %v162_v2 = vld [vmem:[%s136_s15 + $0x10] sm:$0xff]  ;;  %s191_s23 = scalar_lea.hbm %s618_s1, %s302_s16  ;;  %168 = vst [vmem:[%s155_s24] sm:$0xff] %v160_v0  ;;  %v163_v3 = vld [vmem:[%s136_s15 + $0x18] sm:$0xff]  ;;  %s192_s25 = sshll.u32 %s155_s24, 4  ;;  %v164_v4 = vld [vmem:[%s136_s15 + $0x20] sm:$0xff]  ;;  %s193_s25 = int_to_ptr.vmem [resolvable:$true] %s192_s25 }
  0x24   : > { %169 = vst [vmem:[%s155_s24 + $0x8] sm:$0xff] %v161_v1  ;;  %v165_v5 = vld [vmem:[%s136_s15 + $0x28] sm:$0xff]  ;;  %s194_s18 = sshll.u32 %s191_s23, 4  ;;  %v166_v6 = vld [vmem:[%s136_s15 + $0x30] sm:$0xff]  ;;  %v167_v7 = vld [vmem:[%s136_s15 + $0x38] sm:$0xff]  ;;  %s177_s9 = scalar_lea.sflag [#allocation4], %s571_s5  ;;  %s195_s18 = int_to_ptr.hbm [resolvable:$true] %s194_s18 }
  0x25   : > { %170 = vst [vmem:[%s155_s24 + $0x10] sm:$0xff] %v162_v2  ;;  %s413_s26 = sshra.s32 %s195_s18, 4  ;;  %s419_s30 = scalar_lea.hbm %s618_s1, 128  ;;  %s414_s26 = int_to_ptr.hbm [resolvable:$true] %s413_s26 }
  0x26   : > { %171 = vst [vmem:[%s155_s24 + $0x18] sm:$0xff] %v163_v3  ;;  %s415_s27 = scalar_lea.hbm %s414_s26, 64  ;;  %p420_p7 = scmp.lt.s32.totalorder %s414_s26, %s618_s1 }
  0x27   : > { %172 = vst [vmem:[%s155_s24 + $0x20] sm:$0xff] %v164_v4  ;;  %p416_p4 = scmp.ne.s32.totalorder %s414_s26, %s415_s27  ;;  %p421_p8 = scmp.lt.s32.totalorder %s419_s30, %s415_s27 }
  0x28   : > { %173 = vst [vmem:[%s155_s24 + $0x28] sm:$0xff] %v165_v5 }
  0x29   : > { %174 = vst [vmem:[%s155_s24 + $0x30] sm:$0xff] %v166_v6  ;;  %p417_p5 = pnand %p416_p4, %p548_p9  ;;  %p422_p10 = por %p421_p8, %p420_p7 }
  0x2a   : > { %175 = vst [vmem:[%s155_s24 + $0x38] sm:$0xff] %v167_v7 }
  0x2b   : > { %p418_p6 = pneg %p417_p5 }
  0x2d   : > { %p423_p13 = pnand %p422_p10, %p418_p6 }
  0x2f   : > { %426 = shalt.err (!%p423_p13)
}
  0x30   : > { %s485_s4 = smov 256   ;;  %s486_s5 = smov 16  }
  0x31   : > { %305 = dma.vmem_to_hbm [thread:$0]  (%p548_p9), %s193_s25, 1024, %s195_s18, %s177_s9, %s485_s4, %s485_s4, %s486_s5  }
  0x32 PF: > { %s209_s12 = sand.u32 1, %s461_s6   ;;  %p312_p0 = pnand %p285_p12, %p555_p11 }
  0x33   : > { %s210_s13 = scalar_lea.sflag [#allocation4], %s209_s12 }
  0x34   : > { %p313_p1 = pneg %p312_p0 }
  0x36   : > { %456 = dma.done.wait (%p313_p1), %s210_s13, 1024  }
  0x37   : > { %458 = vsyncadd (%p313_p1), %s210_s13, 4294966272  ;;  %s17_s11 = sadd.s32 1, %s481_s11   ;;  %s623_s6 = smov %s465_s7 }
  0x38   : > { %p14_p2 = scmp.ge.s32.totalorder %s17_s11, 4   ;;  %s624_s7 = smov %s469_s8 }
  0x39   : > { %s625_s8 = smov %s553_s20  ;;  %s626_s9 = smov %s477_s10 }
  0x3a   : > { %s627_s10 = smov %s629_s14  ;;  %16 = sbr.rel (!%p14_p2) target bundleno = 6 (0x6), region = 69 }
  0x3f   :  { %216 = vsyncpa [#allocation3], 1 }
  0x40   :  { %218 = vsyncpa [#allocation3 + $0x1], 1 }
  0x41   :  { %219 = vsyncpa [#allocation4], 1 }
  0x42   :  { %221 = vsyncpa [#allocation4 + $0x1], 1 }

</bundles_post_ra>
